<compile_context>
chip_gen: v6e
topology: v6e:2x2x1
jax: 0.10.0
libtpu: 0.0.40
codegen_flags: <defaults>
</compile_context>

<pallas_src>
import numpy as np
from functools import partial

import jax
import jax.numpy as jnp
from jax.experimental import pallas as pl
from jax.experimental.pallas import tpu as pltpu


# ----------------------------------------------------------------------------
# Fused kernel: both 1x1-conv branches + PReLU + folded convs + bilinear x2,
# producing a slot-major (HW, 4*Cq) tensor (slots = pixel-shuffle positions).
# ----------------------------------------------------------------------------
def _make_fused_kernel(H, W, Cq):
    HW = H * W

    def kernel(x_ref, wp1_ref, wpd_ref, wb1_ref, bb_ref, wb_ref, col_ref,
               ap_ref, ab_ref, o_ref):
        x = x_ref[0]                                     # (HW, C)
        ap = ap_ref[0, 0]
        ab = ab_ref[0, 0]

        # ---- branch p: Conv(C->2C, no bias) + PReLU, then folded (wp2 . wc)
        #      applied per pixel-shuffle slot via a block-diagonal weight.
        yp = jnp.dot(x, wp1_ref[...], preferred_element_type=jnp.float32)
        yp = jnp.where(yp >= 0, yp, ap * yp)
        zp = jnp.dot(yp, wpd_ref[...], preferred_element_type=jnp.float32)   # (HW, 4*Cq)

        # ---- branch b: Conv(C->C, bias) + PReLU, then folded (wb2 . wc)
        #      BEFORE the upsample (commutes with the linear resample).
        yb = jnp.dot(x, wb1_ref[...], preferred_element_type=jnp.float32) + bb_ref[...]
        yb = jnp.where(yb >= 0, yb, ab * yb)
        yb2 = jnp.dot(yb, wb_ref[...], preferred_element_type=jnp.float32)   # (HW, Cq)

        # ---- bilinear x2 (align_corners=False) as clamped 2-tap shifted adds.
        # Rows are flattened pixels p = h*W + w; vertical neighbour = shift by W rows.
        up = jnp.concatenate([yb2[:W], yb2[:HW - W]], axis=0)     # row h-1, edge-clamped
        dn = jnp.concatenate([yb2[W:], yb2[HW - W:]], axis=0)     # row h+1, edge-clamped
        v0 = 0.25 * up + 0.75 * yb2                               # output rows 2h
        v1 = 0.75 * yb2 + 0.25 * dn                               # output rows 2h+1

        wcol = jnp.broadcast_to(col_ref[...], (HW, Cq))           # w index per pixel
        is_w_first = wcol == 0
        is_w_last = wcol == (W - 1)

        def lshift(v):                                            # col w-1, edge-clamped
            raw = jnp.concatenate([v[:1], v[:-1]], axis=0)
            return jnp.where(is_w_first, v, raw)

        def rshift(v):                                            # col w+1, edge-clamped
            raw = jnp.concatenate([v[1:], v[-1:]], axis=0)
            return jnp.where(is_w_last, v, raw)

        s00 = 0.25 * lshift(v0) + 0.75 * v0                       # out (2h,   2w)
        s01 = 0.75 * v0 + 0.25 * rshift(v0)                       # out (2h,   2w+1)
        s10 = 0.25 * lshift(v1) + 0.75 * v1                       # out (2h+1, 2w)
        s11 = 0.75 * v1 + 0.25 * rshift(v1)                       # out (2h+1, 2w+1)
        zb = jnp.concatenate([s00, s01, s10, s11], axis=-1)       # (HW, 4*Cq) slot-major

        o_ref[0] = zp + zb

    return kernel


def _fused_upsample_call(x3, wp1p, wpd, wb1, bb, wb, col_ids, ap, ab, *, H, W):
    B, HW, C = x3.shape
    Cq = C // 2
    kernel = _make_fused_kernel(H, W, Cq)
    return pl.pallas_call(
        kernel,
        grid=(B,),
        in_specs=[
            pl.BlockSpec((1, HW, C), lambda b: (b, 0, 0)),          # x (one image / step)
            pl.BlockSpec((C, 4 * Cq), lambda b: (0, 0)),            # wp1 (slot-major cols)
            pl.BlockSpec((4 * Cq, 4 * Cq), lambda b: (0, 0)),       # block-diag(wp2 . wc)
            pl.BlockSpec((C, C), lambda b: (0, 0)),                 # wb1
            pl.BlockSpec((1, C), lambda b: (0, 0)),                 # bias b
            pl.BlockSpec((C, Cq), lambda b: (0, 0)),                # wb2 . wc
            pl.BlockSpec((HW, 1), lambda b: (0, 0)),                # per-pixel w index
            pl.BlockSpec(memory_space=pltpu.MemorySpace.SMEM),      # PReLU alpha (p)
            pl.BlockSpec(memory_space=pltpu.MemorySpace.SMEM),      # PReLU alpha (b)
        ],
        out_specs=pl.BlockSpec((1, HW, 4 * Cq), lambda b: (b, 0, 0)),
        out_shape=jax.ShapeDtypeStruct((B, HW, 4 * Cq), jnp.float32),
        compiler_params=pltpu.CompilerParams(dimension_semantics=("parallel",)),
    )(x3, wp1p, wpd, wb1, bb, wb, col_ids, ap, ab)


# ----------------------------------------------------------------------------
# Forward pass (matches UpSample.forward, factor=2)
# ----------------------------------------------------------------------------
@partial(jax.jit, static_argnums=(2,))
def _upsample_forward_jit(p, x, input_resolution):
    H, W = input_resolution
    B, L, C = x.shape
    assert L == H * W and C % 2 == 0
    Cq = C // 2

    # trace-time weight folding
    Wp = p["wp2"] @ p["wc"][:Cq]                       # (Cq, Cq)  wp2 . wc (branch-p half)
    Wb = p["wb2"] @ p["wc"][Cq:]                       # (C,  Cq)  wb2 . wc (branch-b half)
    # permute wp1 output channels from PixelShuffle order (cq, r, s) to slot-major (r, s, cq)
    wp1p = p["wp1"].reshape(C, Cq, 4).transpose(0, 2, 1).reshape(C, 4 * Cq)
    # apply Wp to each of the 4 shuffle slots with one matmul (block-diagonal weight)
    wpd = jnp.kron(jnp.eye(4, dtype=jnp.float32), Wp)  # (4*Cq, 4*Cq)

    col_ids = jnp.tile(jnp.arange(W, dtype=jnp.int32), H).reshape(H * W, 1)

    x3 = x.reshape(B, H * W, C).astype(jnp.float32)
    out_pre = _fused_upsample_call(x3, wp1p, wpd, p["wb1"], p["bb"], Wb,
                                   col_ids, p["ap"], p["ab"], H=H, W=W)

    # single remaining XLA glue: pixel-shuffle the slot-major output (h, w, r, s, cq)
    # into the (2H, 2W, Cq) row-major layout expected by the module.
    out = (out_pre.reshape(B, H, W, 2, 2, Cq)
                  .transpose(0, 1, 3, 2, 4, 5)
                  .reshape(B, 4 * H * W, Cq))
    return out


def upsample_forward(p, x, input_resolution):
    H, W = input_resolution
    return _upsample_forward_jit(p, x, input_resolution), (2 * H, 2 * W)


# ----------------------------------------------------------------------------
# Parameters (deterministic, synthetic) — shapes follow UpSample.__init__ factor=2
# ----------------------------------------------------------------------------
def init_params(key, in_channels):
    c = in_channels
    cq = c // 2
    ks = jax.random.split(key, 6)
    scale = 0.1
    return {
        # up_p: Conv(C->2C, no bias), PReLU, PixelShuffle(2), Conv(C/2->C/2, no bias)
        "wp1": scale * jax.random.normal(ks[0], (c, 2 * c), jnp.float32),
        "ap": jnp.full((1, 1), 0.25, jnp.float32),     # PReLU default init
        "wp2": scale * jax.random.normal(ks[1], (cq, cq), jnp.float32),
        # up_b: Conv(C->C, bias), PReLU, Upsample(bilinear x2), Conv(C->C/2, no bias)
        "wb1": scale * jax.random.normal(ks[2], (c, c), jnp.float32),
        "bb": scale * jax.random.normal(ks[3], (1, c), jnp.float32),
        "ab": jnp.full((1, 1), 0.25, jnp.float32),
        # final conv on concat([x_p, x_b]) channels: Conv(C -> C/2, no bias)
        "wb2": scale * jax.random.normal(ks[4], (c, cq), jnp.float32),
        "wc": scale * jax.random.normal(ks[5], (c, cq), jnp.float32),
    }


# ----------------------------------------------------------------------------
# Pure-JAX reference (un-fused, mirrors the PyTorch op ordering) for validation
# ----------------------------------------------------------------------------
def _upsample_matrix(n_in, n_out):
    """(n_out, n_in) matrix reproducing nn.Upsample(bilinear, align_corners=False)."""
    o = np.arange(n_out)
    src = (o + 0.5) * (n_in / n_out) - 0.5
    i0 = np.floor(src).astype(np.int64)
    frac = (src - i0).astype(np.float32)
    i0c = np.clip(i0, 0, n_in - 1)
    i1c = np.clip(i0 + 1, 0, n_in - 1)
    u = np.zeros((n_out, n_in), np.float32)
    u[o, i0c] += 1.0 - frac
    u[o, i1c] += frac
    return u


def reference_forward(p, x, input_resolution):
    H, W = input_resolution
    B, L, C = x.shape
    Cq = C // 2
    xs = x.reshape(B, H, W, C).astype(jnp.float32)

    def prelu(v, a):
        return jnp.where(v >= 0, v, a * v)

    # branch p
    yp = prelu(xs @ p["wp1"], p["ap"][0, 0])
    zp = (yp.reshape(B, H, W, Cq, 2, 2)
            .transpose(0, 1, 4, 2, 5, 3)
            .reshape(B, 2 * H, 2 * W, Cq))
    xp = zp @ p["wp2"]

    # branch b
    yb = prelu(xs @ p["wb1"] + p["bb"][0], p["ab"][0, 0])
    UH = jnp.asarray(_upsample_matrix(H, 2 * H))
    UW = jnp.asarray(_upsample_matrix(W, 2 * W))
    zb = jnp.einsum("oh,bhwc->bowc", UH, yb)
    zb = jnp.einsum("pw,bowc->bopc", UW, zb)
    xb = zb @ p["wb2"]

    out = jnp.concatenate([xp, xb], axis=-1) @ p["wc"]
    return out.reshape(B, -1, Cq), (2 * H, 2 * W)


if __name__ == "__main__":
    B, C = 2, 32            # in_channels = 32, scale_factor = 2
    H, W = 8, 8
    L = H * W

    key = jax.random.PRNGKey(0)
    kx, kp = jax.random.split(key)
    x = jax.random.normal(kx, (B, L, C), jnp.float32)
    params = init_params(kp, C)

    out, out_size = upsample_forward(params, x, (H, W))
    out = jax.block_until_ready(out)

    ref, ref_size = reference_forward(params, x, (H, W))
    assert out.shape == (B, 4 * L, C // 2), out.shape
    assert out_size == (2 * H, 2 * W) and ref_size == out_size
    assert np.allclose(np.asarray(out), np.asarray(ref), atol=1e-4, rtol=1e-4)

    print("KERNEL_OK")
</pallas_src>

<mosaic_0001>
module attributes {stable_mosaic.version = 11 : i64} {
  func.func @kernel(%arg0: i32, %arg1: memref<1x64x32xf32, #tpu.memory_space<vmem>>, %arg2: memref<32x64xf32, #tpu.memory_space<vmem>>, %arg3: memref<64x64xf32, #tpu.memory_space<vmem>>, %arg4: memref<32x32xf32, #tpu.memory_space<vmem>>, %arg5: memref<1x32xf32, #tpu.memory_space<vmem>>, %arg6: memref<32x16xf32, #tpu.memory_space<vmem>>, %arg7: memref<64x1xi32, #tpu.memory_space<vmem>>, %arg8: memref<1x1xf32, #tpu.memory_space<smem>>, %arg9: memref<1x1xf32, #tpu.memory_space<smem>>, %arg10: memref<1x64x64xf32, #tpu.memory_space<vmem>>) attributes {dimension_semantics = [#tpu.dimension_semantics<parallel>], iteration_bounds = array<i64: 2>, scalar_prefetch = 0 : i64, scratch_operands = 0 : i64, tpu.core_type = #tpu.core_type<tc>, window_params = [{transform_indices = @transform_0, window_bounds = array<i64: 1, 64, 32>}, {pipeline_mode = #tpu.pipeline_mode<synchronous>, transform_indices = @transform_1, window_bounds = array<i64: 32, 64>}, {pipeline_mode = #tpu.pipeline_mode<synchronous>, transform_indices = @transform_2, window_bounds = array<i64: 64, 64>}, {pipeline_mode = #tpu.pipeline_mode<synchronous>, transform_indices = @transform_3, window_bounds = array<i64: 32, 32>}, {pipeline_mode = #tpu.pipeline_mode<synchronous>, transform_indices = @transform_4, window_bounds = array<i64: 1, 32>}, {pipeline_mode = #tpu.pipeline_mode<synchronous>, transform_indices = @transform_5, window_bounds = array<i64: 32, 16>}, {pipeline_mode = #tpu.pipeline_mode<synchronous>, transform_indices = @transform_6, window_bounds = array<i64: 64, 1>}, {transform_indices = @transform_7, window_bounds = array<i64: 1, 1>}, {transform_indices = @transform_8, window_bounds = array<i64: 1, 1>}, {transform_indices = @transform_9, window_bounds = array<i64: 1, 64, 64>}]} {
    %c0 = arith.constant 0 : index
    %c0_0 = arith.constant 0 : index
    %c0_1 = arith.constant 0 : index
    %0 = vector.load %arg1[%c0, %c0_0, %c0_1] : memref<1x64x32xf32, #tpu.memory_space<vmem>>, vector<1x64x32xf32>
    %1 = vector.shape_cast %0 : vector<1x64x32xf32> to vector<64x32xf32>
    %c0_2 = arith.constant 0 : index
    %c0_3 = arith.constant 0 : index
    %2 = memref.load %arg8[%c0_2, %c0_3] : memref<1x1xf32, #tpu.memory_space<smem>>
    %c0_4 = arith.constant 0 : index
    %c0_5 = arith.constant 0 : index
    %3 = memref.load %arg9[%c0_4, %c0_5] : memref<1x1xf32, #tpu.memory_space<smem>>
    %c0_6 = arith.constant 0 : index
    %c0_7 = arith.constant 0 : index
    %4 = vector.load %arg2[%c0_6, %c0_7] : memref<32x64xf32, #tpu.memory_space<vmem>>, vector<32x64xf32>
    %cst = arith.constant dense<0.000000e+00> : vector<64x64xf32>
    %5 = tpu.matmul %1, %4, %cst {dimension_numbers = #tpu.dot_dimension_numbers<[1], [0], [0], [1], [0, 0, 1, 1], [], []>} : vector<64x32xf32>, vector<32x64xf32>, vector<64x64xf32> -> vector<64x64xf32>
    %cst_8 = arith.constant 0.000000e+00 : f32
    %6 = vector.broadcast %cst_8 : f32 to vector<64x64xf32>
    %7 = arith.cmpf oge, %5, %6 : vector<64x64xf32>
    %8 = vector.broadcast %2 : f32 to vector<64x64xf32>
    %9 = arith.mulf %8, %5 : vector<64x64xf32>
    %10 = arith.select %7, %5, %9 : vector<64x64xi1>, vector<64x64xf32>
    %c0_9 = arith.constant 0 : index
    %c0_10 = arith.constant 0 : index
    %11 = vector.load %arg3[%c0_9, %c0_10] : memref<64x64xf32, #tpu.memory_space<vmem>>, vector<64x64xf32>
    %cst_11 = arith.constant dense<0.000000e+00> : vector<64x64xf32>
    %12 = tpu.matmul %10, %11, %cst_11 {dimension_numbers = #tpu.dot_dimension_numbers<[1], [0], [0], [1], [0, 0, 1, 1], [], []>} : vector<64x64xf32>, vector<64x64xf32>, vector<64x64xf32> -> vector<64x64xf32>
    %c0_12 = arith.constant 0 : index
    %c0_13 = arith.constant 0 : index
    %13 = vector.load %arg4[%c0_12, %c0_13] : memref<32x32xf32, #tpu.memory_space<vmem>>, vector<32x32xf32>
    %cst_14 = arith.constant dense<0.000000e+00> : vector<64x32xf32>
    %14 = tpu.matmul %1, %13, %cst_14 {dimension_numbers = #tpu.dot_dimension_numbers<[1], [0], [0], [1], [0, 0, 1, 1], [], []>} : vector<64x32xf32>, vector<32x32xf32>, vector<64x32xf32> -> vector<64x32xf32>
    %c0_15 = arith.constant 0 : index
    %c0_16 = arith.constant 0 : index
    %15 = vector.load %arg5[%c0_15, %c0_16] : memref<1x32xf32, #tpu.memory_space<vmem>>, vector<1x32xf32>
    %16 = vector.broadcast %15 : vector<1x32xf32> to vector<64x32xf32>
    %17 = arith.addf %14, %16 : vector<64x32xf32>
    %cst_17 = arith.constant 0.000000e+00 : f32
    %18 = vector.broadcast %cst_17 : f32 to vector<64x32xf32>
    %19 = arith.cmpf oge, %17, %18 : vector<64x32xf32>
    %20 = vector.broadcast %3 : f32 to vector<64x32xf32>
    %21 = arith.mulf %20, %17 : vector<64x32xf32>
    %22 = arith.select %19, %17, %21 : vector<64x32xi1>, vector<64x32xf32>
    %c0_18 = arith.constant 0 : index
    %c0_19 = arith.constant 0 : index
    %23 = vector.load %arg6[%c0_18, %c0_19] : memref<32x16xf32, #tpu.memory_space<vmem>>, vector<32x16xf32>
    %cst_20 = arith.constant dense<0.000000e+00> : vector<64x16xf32>
    %24 = tpu.matmul %22, %23, %cst_20 {dimension_numbers = #tpu.dot_dimension_numbers<[1], [0], [0], [1], [0, 0, 1, 1], [], []>} : vector<64x32xf32>, vector<32x16xf32>, vector<64x16xf32> -> vector<64x16xf32>
    %25 = vector.extract_strided_slice %24 {offsets = [0, 0], sizes = [8, 16], strides = [1, 1]} : vector<64x16xf32> to vector<8x16xf32>
    %26 = vector.extract_strided_slice %24 {offsets = [0, 0], sizes = [56, 16], strides = [1, 1]} : vector<64x16xf32> to vector<56x16xf32>
    %27 = tpu.concatenate %25, %26 in 0 : vector<8x16xf32>, vector<56x16xf32> -> vector<64x16xf32>
    %28 = vector.extract_strided_slice %24 {offsets = [8, 0], sizes = [56, 16], strides = [1, 1]} : vector<64x16xf32> to vector<56x16xf32>
    %29 = vector.extract_strided_slice %24 {offsets = [56, 0], sizes = [8, 16], strides = [1, 1]} : vector<64x16xf32> to vector<8x16xf32>
    %30 = tpu.concatenate %28, %29 in 0 : vector<56x16xf32>, vector<8x16xf32> -> vector<64x16xf32>
    %cst_21 = arith.constant 2.500000e-01 : f32
    %31 = vector.broadcast %cst_21 : f32 to vector<64x16xf32>
    %32 = arith.mulf %31, %27 : vector<64x16xf32>
    %cst_22 = arith.constant 7.500000e-01 : f32
    %33 = vector.broadcast %cst_22 : f32 to vector<64x16xf32>
    %34 = arith.mulf %33, %24 : vector<64x16xf32>
    %35 = arith.addf %32, %34 : vector<64x16xf32>
    %cst_23 = arith.constant 7.500000e-01 : f32
    %36 = vector.broadcast %cst_23 : f32 to vector<64x16xf32>
    %37 = arith.mulf %36, %24 : vector<64x16xf32>
    %cst_24 = arith.constant 2.500000e-01 : f32
    %38 = vector.broadcast %cst_24 : f32 to vector<64x16xf32>
    %39 = arith.mulf %38, %30 : vector<64x16xf32>
    %40 = arith.addf %37, %39 : vector<64x16xf32>
    %c0_25 = arith.constant 0 : index
    %c0_26 = arith.constant 0 : index
    %41 = vector.load %arg7[%c0_25, %c0_26] : memref<64x1xi32, #tpu.memory_space<vmem>>, vector<64x1xi32>
    %42 = vector.shape_cast %41 : vector<64x1xi32> to vector<64x1xi32>
    %43 = vector.broadcast %42 : vector<64x1xi32> to vector<64x16xi32>
    %c0_i32 = arith.constant 0 : i32
    %44 = vector.broadcast %c0_i32 : i32 to vector<64x16xi32>
    %45 = arith.cmpi eq, %43, %44 : vector<64x16xi32>
    %c7_i32 = arith.constant 7 : i32
    %46 = vector.broadcast %c7_i32 : i32 to vector<64x16xi32>
    %47 = arith.cmpi eq, %43, %46 : vector<64x16xi32>
    %48 = vector.extract_strided_slice %35 {offsets = [0, 0], sizes = [1, 16], strides = [1, 1]} : vector<64x16xf32> to vector<1x16xf32>
    %49 = vector.extract_strided_slice %35 {offsets = [0, 0], sizes = [63, 16], strides = [1, 1]} : vector<64x16xf32> to vector<63x16xf32>
    %50 = tpu.concatenate %48, %49 in 0 : vector<1x16xf32>, vector<63x16xf32> -> vector<64x16xf32>
    %51 = arith.select %45, %35, %50 : vector<64x16xi1>, vector<64x16xf32>
    %cst_27 = arith.constant 2.500000e-01 : f32
    %52 = vector.broadcast %cst_27 : f32 to vector<64x16xf32>
    %53 = arith.mulf %52, %51 : vector<64x16xf32>
    %cst_28 = arith.constant 7.500000e-01 : f32
    %54 = vector.broadcast %cst_28 : f32 to vector<64x16xf32>
    %55 = arith.mulf %54, %35 : vector<64x16xf32>
    %56 = arith.addf %53, %55 : vector<64x16xf32>
    %cst_29 = arith.constant 7.500000e-01 : f32
    %57 = vector.broadcast %cst_29 : f32 to vector<64x16xf32>
    %58 = arith.mulf %57, %35 : vector<64x16xf32>
    %59 = vector.extract_strided_slice %35 {offsets = [1, 0], sizes = [63, 16], strides = [1, 1]} : vector<64x16xf32> to vector<63x16xf32>
    %60 = vector.extract_strided_slice %35 {offsets = [63, 0], sizes = [1, 16], strides = [1, 1]} : vector<64x16xf32> to vector<1x16xf32>
    %61 = tpu.concatenate %59, %60 in 0 : vector<63x16xf32>, vector<1x16xf32> -> vector<64x16xf32>
    %62 = arith.select %47, %35, %61 : vector<64x16xi1>, vector<64x16xf32>
    %cst_30 = arith.constant 2.500000e-01 : f32
    %63 = vector.broadcast %cst_30 : f32 to vector<64x16xf32>
    %64 = arith.mulf %63, %62 : vector<64x16xf32>
    %65 = arith.addf %58, %64 : vector<64x16xf32>
    %66 = vector.extract_strided_slice %40 {offsets = [0, 0], sizes = [1, 16], strides = [1, 1]} : vector<64x16xf32> to vector<1x16xf32>
    %67 = vector.extract_strided_slice %40 {offsets = [0, 0], sizes = [63, 16], strides = [1, 1]} : vector<64x16xf32> to vector<63x16xf32>
    %68 = tpu.concatenate %66, %67 in 0 : vector<1x16xf32>, vector<63x16xf32> -> vector<64x16xf32>
    %69 = arith.select %45, %40, %68 : vector<64x16xi1>, vector<64x16xf32>
    %cst_31 = arith.constant 2.500000e-01 : f32
    %70 = vector.broadcast %cst_31 : f32 to vector<64x16xf32>
    %71 = arith.mulf %70, %69 : vector<64x16xf32>
    %cst_32 = arith.constant 7.500000e-01 : f32
    %72 = vector.broadcast %cst_32 : f32 to vector<64x16xf32>
    %73 = arith.mulf %72, %40 : vector<64x16xf32>
    %74 = arith.addf %71, %73 : vector<64x16xf32>
    %cst_33 = arith.constant 7.500000e-01 : f32
    %75 = vector.broadcast %cst_33 : f32 to vector<64x16xf32>
    %76 = arith.mulf %75, %40 : vector<64x16xf32>
    %77 = vector.extract_strided_slice %40 {offsets = [1, 0], sizes = [63, 16], strides = [1, 1]} : vector<64x16xf32> to vector<63x16xf32>
    %78 = vector.extract_strided_slice %40 {offsets = [63, 0], sizes = [1, 16], strides = [1, 1]} : vector<64x16xf32> to vector<1x16xf32>
    %79 = tpu.concatenate %77, %78 in 0 : vector<63x16xf32>, vector<1x16xf32> -> vector<64x16xf32>
    %80 = arith.select %47, %40, %79 : vector<64x16xi1>, vector<64x16xf32>
    %cst_34 = arith.constant 2.500000e-01 : f32
    %81 = vector.broadcast %cst_34 : f32 to vector<64x16xf32>
    %82 = arith.mulf %81, %80 : vector<64x16xf32>
    %83 = arith.addf %76, %82 : vector<64x16xf32>
    %84 = tpu.concatenate %56, %65, %74, %83 in 1 : vector<64x16xf32>, vector<64x16xf32>, vector<64x16xf32>, vector<64x16xf32> -> vector<64x64xf32>
    %85 = arith.addf %12, %84 : vector<64x64xf32>
    %c0_35 = arith.constant 0 : index
    %c0_36 = arith.constant 0 : index
    %c0_37 = arith.constant 0 : index
    %86 = vector.load %arg10[%c0_35, %c0_36, %c0_37] : memref<1x64x64xf32, #tpu.memory_space<vmem>>, vector<1x64x64xf32>
    %87 = vector.shape_cast %86 : vector<1x64x64xf32> to vector<64x64xf32>
    %88 = vector.shape_cast %85 : vector<64x64xf32> to vector<1x64x64xf32>
    tpu.vector_store %arg10[%c0_35, %c0_36, %c0_37], %88 {strides = array<i32>} : memref<1x64x64xf32, #tpu.memory_space<vmem>>, vector<1x64x64xf32>,
    return
  }
  func.func @transform_0(%arg0: i32) -> (i32, i32, i32) {
    %c0_i32 = arith.constant 0 : i32
    %c0_i32_0 = arith.constant 0 : i32
    %c0_i32_1 = arith.constant 0 : i32
    return %arg0, %c0_i32, %c0_i32_0 : i32, i32, i32
  }
  func.func @transform_1(%arg0: i32) -> (i32, i32) {
    %c0_i32 = arith.constant 0 : i32
    %c0_i32_0 = arith.constant 0 : i32
    %c0_i32_1 = arith.constant 0 : i32
    return %c0_i32, %c0_i32_0 : i32, i32
  }
  func.func @transform_2(%arg0: i32) -> (i32, i32) {
    %c0_i32 = arith.constant 0 : i32
    %c0_i32_0 = arith.constant 0 : i32
    %c0_i32_1 = arith.constant 0 : i32
    return %c0_i32, %c0_i32_0 : i32, i32
  }
  func.func @transform_3(%arg0: i32) -> (i32, i32) {
    %c0_i32 = arith.constant 0 : i32
    %c0_i32_0 = arith.constant 0 : i32
    %c0_i32_1 = arith.constant 0 : i32
    return %c0_i32, %c0_i32_0 : i32, i32
  }
  func.func @transform_4(%arg0: i32) -> (i32, i32) {
    %c0_i32 = arith.constant 0 : i32
    %c0_i32_0 = arith.constant 0 : i32
    %c0_i32_1 = arith.constant 0 : i32
    return %c0_i32, %c0_i32_0 : i32, i32
  }
  func.func @transform_5(%arg0: i32) -> (i32, i32) {
    %c0_i32 = arith.constant 0 : i32
    %c0_i32_0 = arith.constant 0 : i32
    %c0_i32_1 = arith.constant 0 : i32
    return %c0_i32, %c0_i32_0 : i32, i32
  }
  func.func @transform_6(%arg0: i32) -> (i32, i32) {
    %c0_i32 = arith.constant 0 : i32
    %c0_i32_0 = arith.constant 0 : i32
    %c0_i32_1 = arith.constant 0 : i32
    return %c0_i32, %c0_i32_0 : i32, i32
  }
  func.func @transform_7(%arg0: i32) -> (i32, i32) {
    %c0_i32 = arith.constant 0 : i32
    %c0_i32_0 = arith.constant 0 : i32
    %c0_i32_1 = arith.constant 0 : i32
    return %c0_i32, %c0_i32_0 : i32, i32
  }
  func.func @transform_8(%arg0: i32) -> (i32, i32) {
    %c0_i32 = arith.constant 0 : i32
    %c0_i32_0 = arith.constant 0 : i32
    %c0_i32_1 = arith.constant 0 : i32
    return %c0_i32, %c0_i32_0 : i32, i32
  }
  func.func @transform_9(%arg0: i32) -> (i32, i32, i32) {
    %c0_i32 = arith.constant 0 : i32
    %c0_i32_0 = arith.constant 0 : i32
    %c0_i32_1 = arith.constant 0 : i32
    return %arg0, %c0_i32, %c0_i32_0 : i32, i32, i32
  }
}

</mosaic_0001>

<bundles_post_ra>
// kernel: tile.0
= control target key start
LH: loop header
LB: loop body
LE: loop exit
PB: predicated region body
PF: predicated region fallthrough
CT: control target
= control target key end

     0   :  { %vm3_vm0 = vcmask 7168   ;;  %s84_s8 = smov 125   ;;  %s85_s13 = smov 126   ;;  %s167_s0 = inlined_call_operand.vmem [shape: s32[8,8], index: 0, kind: input, shape index: {}]   ;;  %s168_s1 = inlined_call_operand.vmem [shape: s32[64,1], index: 1, kind: output, shape index: {}]  }
   0x1   :  { %v6_v0 = vld [vmem:[%s167_s0] sm:$0xff]   ;;  %s83_s0 = smov 127   ;;  %s86_s14 = smov 124  }
   0x2   :  { %7 = vrot.lane.b32.xlu0 %v6_v0, %s83_s0  ;;  %23 = vrot.lane.b32.xlu1 %v6_v0, %s84_s8  ;;  %4 = vst.msk [vmem:[%s168_s1] ss:$8 sm:$0xf] %vm3_vm0, %v6_v0   ;;  %5 = vst.msk [vmem:[%s168_s1] ss:$8 sm:$0xf0] %vm3_vm0, %v6_v0  }
   0x3   :  { %s87_s15 = smov 123   ;;  %s88_s16 = smov 122  }
   0x4   :  { %s89_s17 = smov 121  }
   0x6   :  { %15 = vrot.lane.b32.xlu0 %v6_v0, %s85_s13  ;;  %31 = vrot.lane.b32.xlu1 %v6_v0, %s86_s14 }
   0xa   :  { %39 = vrot.lane.b32.xlu0 %v6_v0, %s87_s15  ;;  %47 = vrot.lane.b32.xlu1 %v6_v0, %s88_s16 }
   0xe   :  { %55 = vrot.lane.b32.xlu0 %v6_v0, %s89_s17 }
  0x74   :  { %v8_v1 = vpop.permute.xlu0 %7   ;;  %v24_v2 = vpop.permute.xlu1 %23  }
  0x75   :  { %62 = vst.msk [vmem:[%s168_s1 + $0x1] ss:$8 sm:$0xf] %vm3_vm0, %v8_v1   ;;  %63 = vst.msk [vmem:[%s168_s1 + $0x1] ss:$8 sm:$0xf0] %vm3_vm0, %v8_v1  }
  0x76   :  { %66 = vst.msk [vmem:[%s168_s1 + $0x3] ss:$8 sm:$0xf] %vm3_vm0, %v24_v2   ;;  %67 = vst.msk [vmem:[%s168_s1 + $0x3] ss:$8 sm:$0xf0] %vm3_vm0, %v24_v2  }
  0x78   :  { %v16_v3 = vpop.permute.xlu0 %15   ;;  %v32_v4 = vpop.permute.xlu1 %31  }
  0x79   :  { %64 = vst.msk [vmem:[%s168_s1 + $0x2] ss:$8 sm:$0xf] %vm3_vm0, %v16_v3   ;;  %65 = vst.msk [vmem:[%s168_s1 + $0x2] ss:$8 sm:$0xf0] %vm3_vm0, %v16_v3  }
  0x7a   :  { %68 = vst.msk [vmem:[%s168_s1 + $0x4] ss:$8 sm:$0xf] %vm3_vm0, %v32_v4   ;;  %69 = vst.msk [vmem:[%s168_s1 + $0x4] ss:$8 sm:$0xf0] %vm3_vm0, %v32_v4  }
  0x7c   :  { %v40_v5 = vpop.permute.xlu0 %39   ;;  %v48_v6 = vpop.permute.xlu1 %47  }
  0x7d   :  { %70 = vst.msk [vmem:[%s168_s1 + $0x5] ss:$8 sm:$0xf] %vm3_vm0, %v40_v5   ;;  %71 = vst.msk [vmem:[%s168_s1 + $0x5] ss:$8 sm:$0xf0] %vm3_vm0, %v40_v5  }
  0x7e   :  { %72 = vst.msk [vmem:[%s168_s1 + $0x6] ss:$8 sm:$0xf] %vm3_vm0, %v48_v6   ;;  %73 = vst.msk [vmem:[%s168_s1 + $0x6] ss:$8 sm:$0xf0] %vm3_vm0, %v48_v6  }
  0x80   :  { %v56_v7 = vpop.permute.xlu0 %55  }
  0x81   :  { %74 = vst.msk [vmem:[%s168_s1 + $0x7] ss:$8 sm:$0xf] %vm3_vm0, %v56_v7   ;;  %75 = vst.msk [vmem:[%s168_s1 + $0x7] ss:$8 sm:$0xf0] %vm3_vm0, %v56_v7  }

// kernel: _upsample_forward_jit.1
= control target key start
LH: loop header
LB: loop body
LE: loop exit
PB: predicated region body
PF: predicated region fallthrough
CT: control target
= control target key end

     0   :  { %s1675_s13 = smov 0   ;;  %s2290_s0 = inlined_call_operand.vmem [shape: f32[2,64,32], index: 0, kind: input, shape index: {}]   ;;  %s2291_s1 = inlined_call_operand.vmem [shape: f32[32,64], index: 1, kind: input, shape index: {}]   ;;  %s2292_s2 = inlined_call_operand.vmem [shape: f32[64,64], index: 2, kind: input, shape index: {}]   ;;  %s2293_s3 = inlined_call_operand.vmem [shape: f32[32,32], index: 3, kind: input, shape index: {}]   ;;  %s2294_s4 = inlined_call_operand.vmem [shape: f32[1,32], index: 4, kind: input, shape index: {}]   ;;  %s2295_s5 = inlined_call_operand.vmem [shape: f32[32,16], index: 5, kind: input, shape index: {}]   ;;  %s2296_s6 = inlined_call_operand.vmem [shape: s32[64,1], index: 6, kind: input, shape index: {}]   ;;  %s2297_s7 = inlined_call_operand.<no memory space> [shape: f32[1,1], index: 7, kind: input, shape index: {}]   ;;  %s2298_s8 = inlined_call_operand.<no memory space> [shape: f32[1,1], index: 8, kind: input, shape index: {}]   ;;  %s2299_s9 = inlined_call_operand.vmem [shape: f32[2,64,64], index: 9, kind: output, shape index: {}]  }
   0x1   :  { %14 = sst [smem:[#allocation2]] %s2297_s7 }
   0x2   :  { %15 = sst [smem:[#allocation3]] %s2298_s8 }
   0x3 LB: > { %s1407_s14 = sadd.s32 4294967295, %s1613_s13   ;;  %p1411_p0 = scmp.ge.s32.totalorder %s1613_s13, 1  ;;  %s1613_s13 = sphi %s1675_s13, %s21_s13  }
   0x4   : > { %p289_p1 = scmp.lt.s32.totalorder %s1613_s13, 3 }
   0x6   : > { %p290_p2 = pnand %p1411_p0, %p289_p1 }
   0x7   : > { %p325_p3 = scmp.lt.s32.totalorder (!%p290_p2), %s1407_s14, 1  ;;  %s344_s12 = sld [smem:[#allocation3]] (!%p290_p2) }
   0x8   : > { %293 = sbr.rel (%p290_p2) target bundleno = 606 (0x25e), region = 56  ;;  %s343_s7 = sld [smem:[#allocation2]] (!%p290_p2) }
   0x9   : > { %s1616_s16 = smov (!%p290_p2), 16   ;;  %s1617_s17 = smov (!%p290_p2), 32  }
   0xa   : > { %s1618_s18 = smov (!%p290_p2), 48  }
   0xd   : > { %v515_v0 = vld [vmem:[%s2293_s3 + $0x18] sm:$0xff]  ;;  %v514_v1 = vld [vmem:[%s2293_s3 + $0x10] sm:$0xff]  ;;  %v513_v4 = vld [vmem:[%s2293_s3 + $0x8] sm:$0xff]  ;;  %s2310_s14 = smov (!%p325_p3, %s1407_s14), 1  ;;  %vm349_vm0 = vcmask 261120   ;;  %v1615_v21 = vmov 0   ;;  %v1806_v39 = vstv %s344_s12 }
   0xe   : > { %1525 = vmatprep.subr.mxu1 %v515_v0  ;;  %v348_v2 = vld [vmem:[%s2291_s1 + $0x18] sm:$0xff]  ;;  %v347_v3 = vld [vmem:[%s2291_s1 + $0x10] sm:$0xff]  ;;  %v346_v5 = vld [vmem:[%s2291_s1 + $0x8] sm:$0xff]  ;;  %s1451_s27 = sshll.u32 %s2310_s14, 6  ;;  %1605 = vset.pattern.permute.xlu0 %v1615_v21  ;;  %v1809_v41 = vstv %s343_s7  ;;  %vm2300_vm5 = vcmask 523264  }
   0xf   : > { %1526 = vmatpush3.msra.mxu1 %v515_v0  ;;  %1505 = vmatprep.subr.mxu0 %v348_v2  ;;  %v512_v6 = vld [vmem:[%s2293_s3] sm:$0xff]  ;;  %s1712_s30 = scalar_lea.vmem %s2290_s0, %s1451_s27  ;;  %v656_v11 = vld [vmem:[%s2295_s5 + $0x18] sm:$0xff]  ;;  %v655_v14 = vld [vmem:[%s2295_s5 + $0x10] sm:$0xff]  ;;  %s2240_s21 = scalar_lea.vmem %s2299_s9, %s1451_s27 }
  0x10   : > { %1527 = vmatprep.subr.mxu1 %v514_v1  ;;  %1506 = vmatpush3.msra.mxu0 %v348_v2  ;;  %v335_v7 = vld [vmem:[%s1712_s30] sm:$0xff]  ;;  %v336_v8 = vld [vmem:[%s1712_s30 + $0x8] sm:$0xff]  ;;  %v337_v10 = vld [vmem:[%s1712_s30 + $0x10] sm:$0xff] }
  0x11   : > { %1528 = vmatpush3.msra.mxu1 %v514_v1  ;;  %1507 = vmatprep.subr.mxu0 %v347_v3  ;;  %v345_v9 = vld [vmem:[%s2291_s1] sm:$0xff]  ;;  %v338_v12 = vld [vmem:[%s1712_s30 + $0x18] sm:$0xff]  ;;  %v340_v15 = vld [vmem:[%s1712_s30 + $0x28] sm:$0xff] }
  0x12   : > { %1529 = vmatprep.subr.mxu1 %v513_v4  ;;  %1508 = vmatpush3.msra.mxu0 %v347_v3  ;;  %v339_v13 = vld [vmem:[%s1712_s30 + $0x20] sm:$0xff]  ;;  %v341_v16 = vld [vmem:[%s1712_s30 + $0x30] sm:$0xff]  ;;  %v342_v17 = vld [vmem:[%s1712_s30 + $0x38] sm:$0xff] }
  0x13   : > { %1530 = vmatpush3.msra.mxu1 %v513_v4  ;;  %1509 = vmatprep.subr.mxu0 %v346_v5  ;;  %v654_v18 = vld [vmem:[%s2295_s5 + $0x8] sm:$0xff]  ;;  %v653_v19 = vld [vmem:[%s2295_s5] sm:$0xff]  ;;  %v820_v22 = vld [vmem:[%s2296_s6 + $0x10] sm:$0xff] }
  0x14   : > { %1531 = vmatprep.subr.mxu1 %v512_v6  ;;  %1533 = vmatprep.mubr.msk.f32.mxu1 %vm349_vm0, %v335_v7  ;;  %v818_v20 = vld [vmem:[%s2296_s6] sm:$0xff]  ;;  %v511_v23 = vld [vmem:[%s2292_s2 + $0x38] sm:$0xff]  ;;  %v819_v24 = vld [vmem:[%s2296_s6 + $0x8] sm:$0xff] }
  0x15   : > { %1532 = vmatpush3.msra.mxu1 %v512_v6  ;;  %1510 = vmatpush3.msra.mxu0 %v346_v5  ;;  %v821_v25 = vld [vmem:[%s2296_s6 + $0x18] sm:$0xff]  ;;  %v510_v26 = vld [vmem:[%s2292_s2 + $0x30] sm:$0xff]  ;;  %v509_v27 = vld [vmem:[%s2292_s2 + $0x28] sm:$0xff] }
  0x16   : > { %1534 = vmatmul.mubr.msk.f32.vlgmr.msra.gmra.mxu1 %vm349_vm0, %v336_v8  ;;  %1511 = vmatprep.subr.mxu0 %v345_v9  ;;  %v822_v28 = vld [vmem:[%s2296_s6 + $0x20] sm:$0xff]  ;;  %v823_v29 = vld [vmem:[%s2296_s6 + $0x28] sm:$0xff]  ;;  %v507_v31 = vld [vmem:[%s2292_s2 + $0x18] sm:$0xff] }
  0x17   : > { %1536 = vmatprep.mubr.msk.f32.mxu1 %vm349_vm0, %v337_v10  ;;  %1512 = vmatpush3.msra.mxu0 %v345_v9  ;;  %v508_v30 = vld [vmem:[%s2292_s2 + $0x20] sm:$0xff]  ;;  %v824_v32 = vld [vmem:[%s2296_s6 + $0x30] sm:$0xff]  ;;  %v825_v33 = vld [vmem:[%s2296_s6 + $0x38] sm:$0xff] }
  0x18   : > { %1513 = vmatprep.mubr.msk.f32.mxu0 %vm349_vm0, %v335_v7  ;;  %1545 = vmatprep.subr.mxu0 %v656_v11  ;;  %v506_v34 = vld [vmem:[%s2292_s2 + $0x10] sm:$0xff]  ;;  %v505_v35 = vld [vmem:[%s2292_s2 + $0x8] sm:$0xff]  ;;  %v504_v36 = vld [vmem:[%s2292_s2] sm:$0xff] }
  0x19   : > { %1514 = vmatmul.mubr.msk.f32.vlgmr.msra.gmra.mxu0 %vm349_vm0, %v336_v8  ;;  %1606 = vset.pattern.permute.xlu1 %v1615_v21  ;;  %v1804_v37 = vld [vmem:[%s2294_s4] ss:$0 sm:$0xff] }
  0x1a   : > { %1537 = vmatmul.mubr.msk.f32.gmra.mxu1 %vm349_vm0, %v338_v12  ;;  %1516 = vmatprep.mubr.msk.f32.mxu0 %vm349_vm0, %v337_v10 }
  0x1b   : > { %1539 = vmatprep.mubr.msk.f32.mxu1 %vm349_vm0, %v339_v13  ;;  %1546 = vmatpush3.msra.mxu0 %v656_v11 }
  0x1c   : > { %1547 = vmatprep.subr.mxu0 %v655_v14  ;;  %827 = vperm.xlu0 %1605, %v818_v20  }
  0x1d   : > { %1517 = vmatmul.mubr.msk.f32.gmra.mxu0 %vm349_vm0, %v338_v12  ;;  %833 = vperm.xlu1 %1606, %v820_v22  }
  0x1e   : > { %1540 = vmatmul.mubr.msk.f32.gmra.mxu1 %vm349_vm0, %v340_v15  ;;  %1519 = vmatprep.mubr.msk.f32.mxu0 %vm349_vm0, %v339_v13 }
  0x1f   : > { %1542 = vmatprep.mubr.msk.f32.mxu1 %vm349_vm0, %v341_v16  ;;  %1548 = vmatpush3.msra.mxu0 %v655_v14 }
  0x20   : > { %1549 = vmatprep.subr.mxu0 %v654_v18  ;;  %1565 = vmatprep.subr.mxu1 %v511_v23 }
  0x21   : > { %1520 = vmatmul.mubr.msk.f32.gmra.mxu0 %vm349_vm0, %v340_v15  ;;  %1566 = vmatpush3.msra.mxu1 %v511_v23 }
  0x22   : > { %1543 = vmatmul.mubr.msk.f32.gmra.mxu1 %vm349_vm0, %v342_v17  ;;  %1522 = vmatprep.mubr.msk.f32.mxu0 %vm349_vm0, %v341_v16 }
  0x23   : > { %1550 = vmatpush3.msra.mxu0 %v654_v18  ;;  %1567 = vmatprep.subr.mxu1 %v510_v26 }
  0x24   : > { %1551 = vmatprep.subr.mxu0 %v653_v19  ;;  %830 = vperm.xlu0 %1605, %v819_v24  }
  0x25   : > { %1523 = vmatmul.mubr.msk.f32.gmra.mxu0 %vm349_vm0, %v342_v17  ;;  %836 = vperm.xlu1 %1606, %v821_v25  }
  0x26   : > { %1552 = vmatpush3.msra.mxu0 %v653_v19  ;;  %1568 = vmatpush3.msra.mxu1 %v510_v26 }
  0x27   : > { %1569 = vmatprep.subr.mxu1 %v509_v27 }
  0x28   : > { %1570 = vmatpush3.msra.mxu1 %v509_v27  ;;  %839 = vperm.xlu0 %1605, %v822_v28  }
  0x29   : > { %842 = vperm.xlu1 %1606, %v823_v29   ;;  %1571 = vmatprep.subr.mxu1 %v508_v30 }
  0x2a   : > { %1572 = vmatpush3.msra.mxu1 %v508_v30 }
  0x2b   : > { %1573 = vmatprep.subr.mxu1 %v507_v31 }
  0x2c   : > { %845 = vperm.xlu0 %1605, %v824_v32   ;;  %1574 = vmatpush3.msra.mxu1 %v507_v31 }
  0x2d   : > { %848 = vperm.xlu1 %1606, %v825_v33   ;;  %1575 = vmatprep.subr.mxu1 %v506_v34 }
  0x2e   : > { %1576 = vmatpush3.msra.mxu1 %v506_v34 }
  0x2f   : > { %1577 = vmatprep.subr.mxu1 %v505_v35 }
  0x30   : > { %1578 = vmatpush3.msra.mxu1 %v505_v35 }
  0x31   : > { %1579 = vmatprep.subr.mxu1 %v504_v36 }
  0x32   : > { %1580 = vmatpush3.msra.mxu1 %v504_v36 }
  0xd6   : > { %v1535_v38 = vpop.f32.mrf.mxu1 }
  0xd7   : > { %v595_v40 = vadd.f32 %v1535_v38, %v1804_v37  ;;  %v1852_v38 = vpop.permute.xlu1 %833 }
  0xd8   : > { %v589_v42 = vpop.f32.mrf.mxu1 }
  0xd9   : > { %v638_v43 = vmul.f32 %v1806_v39, %v595_v40  ;;  %v590_v44 = vadd.f32 %v1804_v37, %v589_v42  ;;  %v1515_v45 = vpop.f32.mrf.mxu0  ;;  %vm629_vm1 = vcmp.ge.f32.partialorder %v595_v40, 0.0 }
  0xda   : > { %v1538_v46 = vpop.f32.mrf.mxu1  ;;  %vm480_vm2 = vcmp.ge.f32.partialorder %v1515_v45, 0.0  ;;  %v489_v47 = vmul.f32 %v1515_v45, %v1809_v41 }
  0xdb   : > { %vm628_vm3 = vcmp.ge.f32.partialorder %v590_v44, 0.0  ;;  %v637_v48 = vmul.f32 %v1806_v39, %v590_v44  ;;  %v605_v49 = vadd.f32 %v1538_v46, %v1804_v37  ;;  %v440_v50 = vpop.f32.mrf.mxu0  ;;  %v646_v53 = vsel %vm629_vm1, %v595_v40, %v638_v43 }
  0xdc   : > { %v599_v51 = vpop.f32.mrf.mxu1  ;;  %vm479_vm4 = vcmp.ge.f32.partialorder %v440_v50, 0.0  ;;  %v488_v52 = vmul.f32 %v1809_v41, %v440_v50  ;;  %v497_v56 = vsel %vm480_vm2, %v1515_v45, %v489_v47 }
  0xdd   : > { %v600_v54 = vadd.f32 %v1804_v37, %v599_v51  ;;  %v645_v55 = vsel %vm628_vm3, %v590_v44, %v637_v48  ;;  %v1518_v57 = vpop.f32.mrf.mxu0  ;;  %v640_v58 = vmul.f32 %v1806_v39, %v605_v49  ;;  %vm631_vm7 = vcmp.ge.f32.partialorder %v605_v49, 0.0 }
  0xde   : > { %v1541_v59 = vpop.f32.mrf.mxu1  ;;  %1553 = vmatprep.mubr.msk.f32.mxu0 %vm349_vm0, %v645_v55  ;;  %v496_v60 = vsel %vm479_vm4, %v440_v50, %v488_v52  ;;  %vm482_vm6 = vcmp.ge.f32.partialorder %v1518_v57, 0.0  ;;  %v491_v61 = vmul.f32 %v1518_v57, %v1809_v41  ;;  %vm852_vm3 = vcmp.eq.s32.totalorder %v1852_v38, 0  ;;  %v1868_v52 = vpop.permute.xlu1 %836 }
  0xdf   : > { %vm630_vm8 = vcmp.ge.f32.partialorder %v600_v54, 0.0  ;;  %v639_v62 = vmul.f32 %v1806_v39, %v600_v54  ;;  %v615_v63 = vadd.f32 %v1541_v59, %v1804_v37  ;;  %1554 = vmatmul.mubr.msk.f32.vlgmr.msra.gmra.mxu0 %vm349_vm0, %v646_v53  ;;  %1581 = vmatprep.mubr.msk.f32.mxu1 %vm2300_vm5, %v496_v60  ;;  %v450_v0 = vpop.f32.mrf.mxu0  ;;  %v648_v9 = vsel %vm631_vm7, %v605_v49, %v640_v58 }
  0xe0   : > { %v609_v1 = vpop.f32.mrf.mxu1  ;;  %1582 = vmatmul.mubr.msk.f32.vlgmr.msra.gmra.mxu1 %vm2300_vm5, %v497_v56  ;;  %vm481_vm9 = vcmp.ge.f32.partialorder %v450_v0, 0.0  ;;  %v490_v2 = vmul.f32 %v1809_v41, %v450_v0  ;;  %v499_v3 = vsel %vm482_vm6, %v1518_v57, %v491_v61  ;;  %vm874_vm4 = vcmask 1040384  }
  0xe1   : > { %vm633_vm10 = vcmp.ge.f32.partialorder %v615_v63, 0.0  ;;  %v642_v4 = vmul.f32 %v1806_v39, %v615_v63  ;;  %v610_v5 = vadd.f32 %v1804_v37, %v609_v1  ;;  %v647_v6 = vsel %vm630_vm8, %v600_v54, %v639_v62  ;;  %v1521_v7 = vpop.f32.mrf.mxu0 }
  0xe2   : > { %v1544_v8 = vpop.f32.mrf.mxu1  ;;  %1556 = vmatprep.mubr.msk.f32.mxu0 %vm349_vm0, %v647_v6  ;;  %v498_v10 = vsel %vm481_vm9, %v450_v0, %v490_v2  ;;  %vm484_vm11 = vcmp.ge.f32.partialorder %v1521_v7, 0.0  ;;  %v493_v11 = vmul.f32 %v1521_v7, %v1809_v41  ;;  %vm931_vm6 = vcmask 1046528  }
  0xe3   : > { %vm632_vm12 = vcmp.ge.f32.partialorder %v610_v5, 0.0  ;;  %v641_v12 = vmul.f32 %v1806_v39, %v610_v5  ;;  %v625_v13 = vadd.f32 %v1544_v8, %v1804_v37  ;;  %1557 = vmatmul.mubr.msk.f32.gmra.mxu0 %vm349_vm0, %v648_v9  ;;  %1584 = vmatprep.mubr.msk.f32.mxu1 %vm2300_vm5, %v498_v10  ;;  %v460_v14 = vpop.f32.mrf.mxu0  ;;  %v650_v16 = vsel %vm633_vm10, %v615_v63, %v642_v4  ;;  %v1888_v63 = vpop.permute.xlu0 %827 }
  0xe4   : > { %v619_v15 = vpop.f32.mrf.mxu1  ;;  %1585 = vmatmul.mubr.msk.f32.gmra.mxu1 %vm2300_vm5, %v499_v3  ;;  %vm483_vm13 = vcmp.ge.f32.partialorder %v460_v14, 0.0  ;;  %v492_v17 = vmul.f32 %v1809_v41, %v460_v14  ;;  %v501_v18 = vsel %vm484_vm11, %v1521_v7, %v493_v11  ;;  %vm853_vm7 = vcmp.eq.s32.totalorder %v1868_v52, 0 }
  0xe5   : > { %vm635_vm14 = vcmp.ge.f32.partialorder %v625_v13, 0.0  ;;  %v644_v19 = vmul.f32 %v1806_v39, %v625_v13  ;;  %v620_v20 = vadd.f32 %v1804_v37, %v619_v15  ;;  %v649_v21 = vsel %vm632_vm12, %v610_v5, %v641_v12  ;;  %v1524_v22 = vpop.f32.mrf.mxu0  ;;  %v1900_v5 = vpop.permute.xlu1 %842 }
  0xe6   : > { %1559 = vmatprep.mubr.msk.f32.mxu0 %vm349_vm0, %v649_v21  ;;  %vm486_vm15 = vcmp.ge.f32.partialorder %v1524_v22, 0.0  ;;  %v495_v23 = vmul.f32 %v1524_v22, %v1809_v41  ;;  %v500_v24 = vsel %vm483_vm13, %v460_v14, %v492_v17  ;;  %vm858_vm8 = vcmp.eq.s32.totalorder %v1888_v63, 7 }
  0xe7   : > { %vm634_vm1 = vcmp.ge.f32.partialorder %v620_v20, 0.0  ;;  %v643_v25 = vmul.f32 %v1806_v39, %v620_v20  ;;  %1560 = vmatmul.mubr.msk.f32.gmra.mxu0 %vm349_vm0, %v650_v16  ;;  %v470_v26 = vpop.f32.mrf.mxu0  ;;  %1587 = vmatprep.mubr.msk.f32.mxu1 %vm2300_vm5, %v500_v24  ;;  %v652_v27 = vsel %vm635_vm14, %v625_v13, %v644_v19  ;;  %vm850_vm9 = vcmp.eq.s32.totalorder %v1888_v63, 0 }
  0xe8   : > { %vm485_vm2 = vcmp.ge.f32.partialorder %v470_v26, 0.0  ;;  %v494_v28 = vmul.f32 %v1809_v41, %v470_v26  ;;  %1588 = vmatmul.mubr.msk.f32.gmra.mxu1 %vm2300_vm5, %v501_v18  ;;  %v503_v30 = vsel %vm486_vm15, %v1524_v22, %v495_v23  ;;  %vm855_vm10 = vcmp.eq.s32.totalorder %v1900_v5, 0 }
  0xe9   : > { %v651_v29 = vsel %vm634_vm1, %v620_v20, %v643_v25  ;;  %vm860_vm11 = vcmp.eq.s32.totalorder %v1852_v38, 7  ;;  %vm861_vm14 = vcmp.eq.s32.totalorder %v1868_v52, 7  ;;  %vm863_vm1 = vcmp.eq.s32.totalorder %v1900_v5, 7 }
  0xea   : > { %1562 = vmatprep.mubr.msk.f32.mxu0 %vm349_vm0, %v651_v29  ;;  %v502_v31 = vsel %vm485_vm2, %v470_v26, %v494_v28 }
  0xeb   : > { %1563 = vmatmul.mubr.msk.f32.gmra.mxu0 %vm349_vm0, %v652_v27  ;;  %1590 = vmatprep.mubr.msk.f32.mxu1 %vm2300_vm5, %v502_v31  ;;  %v1955_v31 = vpop.permute.xlu1 %848 }
  0xec   : > { %1591 = vmatmul.mubr.msk.f32.gmra.mxu1 %vm2300_vm5, %v503_v30  ;;  %vm857_vm15 = vcmp.eq.s32.totalorder %v1955_v31, 0  ;;  %vm865_vm5 = vcmp.eq.s32.totalorder %v1955_v31, 7 }
 0x19f   : > { %v1555_v32 = vpop.f32.mrf.mxu0 }
 0x1a0   : > { %v794_v36 = vmul.f32 0.75, %v1555_v32  ;;  %v787_v39 = vmul.f32 0.25, %v1555_v32  ;;  %v1957_v32 = vpop.permute.xlu0 %830 }
 0x1a1   : > { %v747_v33 = vpop.f32.mrf.mxu0  ;;  %vm851_vm12 = vcmp.eq.s32.totalorder %v1957_v32, 0  ;;  %vm859_vm13 = vcmp.eq.s32.totalorder %v1957_v32, 7 }
 0x1a2   : > { %v786_v34 = vmul.f32 0.25, %v747_v33  ;;  %v793_v37 = vmul.f32 0.75, %v747_v33 }
 0x1a3   : > { %v1558_v35 = vpop.f32.mrf.mxu0 }
 0x1a4   : > { %v1854_v41 = vadd.f32 %v794_v36, %v786_v34  ;;  %v1856_v42 = vmul.f32 0.75, %v1558_v35  ;;  %v1858_v46 = vadd.f32 %v793_v37, %v786_v34  ;;  %v1876_v57 = vadd.f32 %v793_v37, %v787_v39 }
 0x1a5   : > { %v757_v40 = vpop.f32.mrf.mxu0  ;;  %v789_v1 = vmul.f32 0.25, %v1558_v35 }
 0x1a6   : > { %v788_v43 = vmul.f32 0.25, %v757_v40  ;;  %v795_v44 = vmul.f32 0.75, %v757_v40  ;;  %v876_v50 = vrot.slane %v1854_v41, 7  ;;  %v932_v55 = vrot.slane %v1858_v46, 1 }
 0x1a7   : > { %v1561_v45 = vpop.f32.mrf.mxu0  ;;  %v933_v56 = vrot.slane %v1854_v41, 1  ;;  %v988_v6 = vrot.slane %v1876_v57, 7  ;;  %v1927_v18 = vmul.f32 0.75, %v1858_v46 }
 0x1a8   : > { %v1860_v47 = vadd.f32 %v795_v44, %v787_v39  ;;  %v1863_v48 = vadd.f32 %v1856_v42, %v788_v43  ;;  %v1886_v60 = vmul.f32 0.75, %v1561_v45  ;;  %v1903_v7 = vadd.f32 %v794_v36, %v788_v43 }
 0x1a9   : > { %v767_v49 = vpop.f32.mrf.mxu0  ;;  %v934_v3 = vsel %vm931_vm6, %v932_v55, %v933_v56  ;;  %v1905_v8 = vadd.f32 %v795_v44, %v789_v1  ;;  %v791_v17 = vmul.f32 0.25, %v1561_v45  ;;  %v1011_v20 = vsel %vm874_vm4, %v1876_v57, %v988_v6 }
 0x1aa   : > { %v878_v51 = vrot.slane %v1860_v47, 7  ;;  %v880_v53 = vrot.slane %v1863_v48, 7  ;;  %v790_v61 = vmul.f32 0.25, %v767_v49  ;;  %v797_v62 = vmul.f32 0.75, %v767_v49 }
 0x1ab   : > { %v1884_v59 = vpop.f32.mrf.mxu0  ;;  %v935_v11 = vrot.slane %v1860_v47, 1  ;;  %v937_v12 = vrot.slane %v1863_v48, 1  ;;  %v956_v13 = vsel %vm858_vm8, %v1858_v46, %v934_v3  ;;  %v989_v21 = vrot.slane %v1903_v7, 7 }
 0x1ac   : > { %v879_v54 = vsel %vm874_vm4, %v876_v50, %v878_v51  ;;  %v881_v0 = vsel %vm874_vm4, %v878_v51, %v880_v53  ;;  %v1907_v9 = vadd.f32 %v797_v62, %v789_v1  ;;  %v1910_v10 = vadd.f32 %v1886_v60, %v790_v61  ;;  %v2001_v1 = vpop.permute.xlu0 %839 }
 0x1ad   : > { %v1881_v58 = vsel %vm852_vm3, %v1860_v47, %v879_v54  ;;  %v1897_v2 = vsel %vm853_vm7, %v1863_v48, %v881_v0  ;;  %v777_v4 = vpop.f32.mrf.mxu0  ;;  %v1919_v14 = vmul.f32 0.75, %v1884_v59  ;;  %v964_v19 = vmul.f32 0.25, %v956_v13 }
 0x1ae   : > { %v1921_v15 = vmul.f32 0.25, %v777_v4  ;;  %v1923_v16 = vmul.f32 0.75, %v777_v4  ;;  %v991_v22 = vrot.slane %v1905_v8, 7  ;;  %v882_v23 = vrot.slane %v1907_v9, 7 }
 0x1af   : > { %v884_v24 = vrot.slane %v1910_v10, 7  ;;  %v938_v25 = vsel %vm931_vm6, %v935_v11, %v937_v12  ;;  %v972_v26 = vadd.f32 %v964_v19, %v1927_v18  ;;  %v1012_v30 = vsel %vm850_vm9, %v1876_v57, %v1011_v20 }
 0x1b0   : > { %v1941_v27 = vadd.f32 %v1923_v16, %v791_v17  ;;  %v1945_v28 = vadd.f32 %v1919_v14, %v1921_v15  ;;  %v1960_v33 = vadd.f32 %v1856_v42, %v790_v61  ;;  %v1020_v35 = vmul.f32 0.25, %v1012_v30 }
 0x1b1   : > { %v885_v29 = vsel %vm874_vm4, %v882_v23, %v884_v24  ;;  %1100 = vrot.lane.b32.xlu0 %v972_v26, %s1616_s16  ;;  %v1969_v36 = vmul.f32 0.75, %v1876_v57  ;;  %v992_v37 = vsel %vm874_vm4, %v989_v21, %v991_v22  ;;  %v958_v39 = vsel %vm860_vm11, %v1860_v47, %v938_v25 }
 0x1b2   : > { %v1966_v34 = vsel %vm855_vm10, %v1910_v10, %v885_v29  ;;  %v1980_v42 = vadd.f32 %v797_v62, %v791_v17  ;;  %v936_v43 = vsel %vm931_vm6, %v933_v56, %v935_v11  ;;  %v886_v44 = vrot.slane %v1941_v27, 7 }
 0x1b3   : > { %v1036_v40 = vadd.f32 %v1969_v36, %v1020_v35  ;;  %v888_v45 = vrot.slane %v1945_v28, 7  ;;  %v1014_v49 = vsel %vm852_vm3, %v1905_v8, %v992_v37  ;;  %v939_v51 = vrot.slane %v1907_v9, 1 }
 0x1b4   : > { %v993_v54 = vrot.slane %v1960_v33, 7  ;;  %v957_v55 = vsel %vm859_vm13, %v1854_v41, %v936_v43  ;;  %v1995_v56 = vmul.f32 0.75, %v1854_v41  ;;  %v990_v0 = vsel %vm874_vm4, %v988_v6, %v989_v21 }
 0x1b5   : > { %1132 = vrot.lane.b32.xlu0 %v1036_v40, %s1617_s17  ;;  %v965_v61 = vmul.f32 0.25, %v957_v55  ;;  %v889_v62 = vsel %vm874_vm4, %v886_v44, %v888_v45  ;;  %v809_v3 = vmul.f32 0.25, %v1884_v59  ;;  %v1013_v11 = vsel %vm851_vm12, %v1903_v7, %v990_v0 }
 0x1b6   : > { %v2008_v4 = vsel %vm857_vm15, %v1945_v28, %v889_v62  ;;  %vm862_vm2 = vcmp.eq.s32.totalorder %v2001_v1, 7  ;;  %v966_v13 = vmul.f32 0.25, %v958_v39  ;;  %v1049_v6 = vrot.slane %v1960_v33, 1  ;;  %v2050_v62 = vpop.permute.xlu0 %845 }
 0x1b7   : > { %v1051_v17 = vrot.slane %v1980_v42, 1  ;;  %v973_v59 = vadd.f32 %v965_v61, %v1995_v56  ;;  %v2018_v19 = vmul.f32 0.25, %v1881_v58  ;;  %v1022_v20 = vmul.f32 0.25, %v1014_v49 }
 0x1b8   : > { %v940_v21 = vsel %vm931_vm6, %v937_v12, %v939_v51  ;;  %v1021_v25 = vmul.f32 0.25, %v1013_v11  ;;  %vm854_vm3 = vcmp.eq.s32.totalorder %v2001_v1, 0  ;;  %v994_v26 = vsel %vm874_vm4, %v991_v22, %v993_v54 }
 0x1b9   : > { %1102 = vrot.lane.b32.xlu1 %v973_v59, %s1616_s16  ;;  %v1029_v29 = vmul.f32 0.75, %v1903_v7  ;;  %v2028_v30 = vmul.f32 0.75, %v1860_v47  ;;  %v1045_v58 = vrot.slane %v1903_v7, 1  ;;  %v941_v35 = vrot.slane %v1910_v10, 1 }
 0x1ba   : > { %v943_v37 = vrot.slane %v1941_v27, 1  ;;  %v1047_v12 = vrot.slane %v1905_v8, 1  ;;  %v1044_v39 = vrot.slane %v1876_v57, 1  ;;  %v1052_v22 = vsel %vm931_vm6, %v1049_v6, %v1051_v17 }
 0x1bb   : > { %v995_v40 = vrot.slane %v1980_v42, 7  ;;  %v1037_v47 = vadd.f32 %v1029_v29, %v1021_v25  ;;  %v974_v43 = vadd.f32 %v966_v13, %v2028_v30  ;;  %v959_v45 = vsel %vm861_vm14, %v1863_v48, %v940_v21 }
 0x1bc   : > { %v2046_v49 = vadd.f32 %v1886_v60, %v1921_v15  ;;  %v1048_v55 = vsel %vm931_vm6, %v1045_v58, %v1047_v12  ;;  %v1046_v61 = vsel %vm931_vm6, %v1044_v39, %v1045_v58  ;;  %v1015_v0 = vsel %vm853_vm7, %v1960_v33, %v994_v26 }
 0x1bd   : > { %1134 = vrot.lane.b32.xlu1 %v1037_v47, %s1617_s17  ;;  %1104 = vrot.lane.b32.xlu0 %v974_v43, %s1616_s16  ;;  %v1069_v11 = vsel %vm859_vm13, %v1903_v7, %v1048_v55  ;;  %v2061_v60 = vmul.f32 0.75, %v1905_v8  ;;  %v1068_v15 = vsel %vm858_vm8, %v1876_v57, %v1046_v61  ;;  %v1071_v13 = vsel %vm861_vm14, %v1960_v33, %v1052_v22 }
 0x1be   : > { %v944_v59 = vsel %vm931_vm6, %v941_v35, %v943_v37  ;;  %v1077_v21 = vmul.f32 0.25, %v1069_v11  ;;  %v942_v25 = vsel %vm931_vm6, %v939_v51, %v941_v35  ;;  %v945_v26 = vrot.slane %v1945_v28, 1 }
 0x1bf   : > { %v1038_v7 = vadd.f32 %v2061_v60, %v1022_v20  ;;  %v1076_v58 = vmul.f32 0.25, %v1068_v15  ;;  %v996_v39 = vsel %vm874_vm4, %v993_v54, %v995_v40  ;;  %vm864_vm7 = vcmp.eq.s32.totalorder %v2050_v62, 7 }
 0x1c0   : > { %v967_v57 = vmul.f32 0.25, %v959_v45  ;;  %v2078_v52 = vadd.f32 %v809_v3, %v1919_v14  ;;  %v1085_v22 = vadd.f32 %v1077_v21, %v1029_v29  ;;  %v960_v51 = vsel %vm862_vm2, %v1907_v9, %v942_v25 }
 0x1c1   : > { %v910_v35 = vmul.f32 0.25, %v1897_v2  ;;  %v1023_v47 = vmul.f32 0.25, %v1015_v0  ;;  %v1079_v20 = vmul.f32 0.25, %v1071_v13  ;;  %v961_v43 = vsel %vm863_vm1, %v1910_v10, %v944_v59  ;;  %1136 = vrot.lane.b32.xlu0 %v1038_v7, %s1617_s17 }
 0x1c2   : > { %v2089_v54 = vadd.f32 %v809_v3, %v1923_v16  ;;  %1166 = vrot.lane.b32.xlu1 %v1085_v22, %s1618_s18  ;;  %v918_v14 = vmul.f32 0.75, %v1863_v48  ;;  %v1016_v2 = vsel %vm854_vm3, %v1980_v42, %v996_v39  ;;  %v1050_v29 = vsel %vm931_vm6, %v1047_v12, %v1049_v6 }
 0x1c3   : > { %vm856_vm8 = vcmp.eq.s32.totalorder %v2050_v62, 0  ;;  %v997_v45 = vrot.slane %v2046_v49, 7  ;;  %v955_v55 = vsel %vm931_vm6, %v945_v26, %v1945_v28  ;;  %v1084_v16 = vadd.f32 %v1076_v58, %v1969_v36 }
 0x1c4   : > { %v968_v3 = vmul.f32 0.25, %v960_v51  ;;  %v912_v61 = vmul.f32 0.25, %v1966_v34  ;;  %v969_v0 = vmul.f32 0.25, %v961_v43  ;;  %v1053_v11 = vrot.slane %v2046_v49, 1 }
 0x1c5   : > { %v975_v15 = vadd.f32 %v967_v57, %v918_v14  ;;  %1164 = vrot.lane.b32.xlu0 %v1084_v16, %s1618_s18  ;;  %v1031_v6 = vmul.f32 0.75, %v1960_v33  ;;  %v919_v12 = vmul.f32 0.75, %v1907_v9  ;;  %v1024_v13 = vmul.f32 0.25, %v1016_v2 }
 0x1c6   : > { %v1070_v59 = vsel %vm860_vm11, %v1905_v8, %v1050_v29  ;;  %v914_v36 = vmul.f32 0.25, %v2008_v4  ;;  %v963_v34 = vsel %vm865_vm5, %v1945_v28, %v955_v55  ;;  %v999_v21 = vrot.slane %v2089_v54, 7 }
 0x1c7   : > { %1106 = vrot.lane.b32.xlu1 %v975_v15, %s1616_s16  ;;  %v946_v25 = vsel %vm931_vm6, %v943_v37, %v945_v26  ;;  %v1039_v33 = vadd.f32 %v1031_v6, %v1023_v47  ;;  %v976_v7 = vadd.f32 %v968_v3, %v919_v12  ;;  %v1087_v58 = vadd.f32 %v1079_v20, %v1031_v6 }
 0x1c8   : > { %v2118_v39 = vmul.f32 0.75, %v1980_v42  ;;  %v1078_v38 = vmul.f32 0.25, %v1070_v59  ;;  %v920_v8 = vmul.f32 0.75, %v1910_v10  ;;  %v921_v4 = vmul.f32 0.75, %v1941_v27 }
 0x1c9   : > { %v922_v57 = vmul.f32 0.75, %v1945_v28  ;;  %1108 = vrot.lane.b32.xlu0 %v976_v7, %s1616_s16  ;;  %v962_v37 = vsel %vm864_vm7, %v1941_v27, %v946_v25  ;;  %v875_v26 = vrot.slane %v1858_v46, 7  ;;  %v2131_v51 = vadd.f32 %v2028_v30, %v2018_v19 }
 0x1ca   : > { %v1040_v22 = vadd.f32 %v2118_v39, %v1024_v13  ;;  %v1000_v47 = vsel %vm874_vm4, %v997_v45, %v999_v21  ;;  %v2135_v20 = vadd.f32 %v918_v14, %v910_v35  ;;  %v883_v28 = vsel %vm874_vm4, %v880_v53, %v882_v23 }
 0x1cb   : > { %1138 = vrot.lane.b32.xlu1 %v1039_v33, %s1617_s17  ;;  %v2142_v43 = vadd.f32 %v920_v8, %v912_v61  ;;  %v898_v2 = vsel %vm874_vm4, %v1858_v46, %v875_v26  ;;  %v877_v19 = vsel %vm874_vm4, %v875_v26, %v876_v50  ;;  %v903_v30 = vsel %vm854_vm3, %v1907_v9, %v883_v28 }
 0x1cc   : > { %v887_v48 = vsel %vm874_vm4, %v884_v24, %v886_v44  ;;  %v899_v53 = vsel %vm850_vm9, %v1858_v46, %v898_v2  ;;  %v900_v23 = vsel %vm851_vm12, %v1854_v41, %v877_v19  ;;  %v911_v35 = vmul.f32 0.25, %v903_v30  ;;  %v1583_v19 = vpop.f32.mrf.mxu1 }
 0x1cd   : > { %v905_v50 = vsel %vm856_vm8, %v1941_v27, %v887_v48  ;;  %1140 = vrot.lane.b32.xlu0 %v1040_v22, %s1617_s17  ;;  %v907_v9 = vmul.f32 0.25, %v899_v53  ;;  %v908_v14 = vmul.f32 0.25, %v900_v23  ;;  %v2167_v29 = vadd.f32 %v922_v57, %v914_v36 }
 0x1ce   : > { %v913_v10 = vmul.f32 0.25, %v905_v50  ;;  %v998_v46 = vsel %vm874_vm4, %v995_v40, %v997_v45  ;;  %v1001_v63 = vrot.slane %v2078_v52, 7  ;;  %v1086_v41 = vadd.f32 %v1078_v38, %v2061_v60  ;;  %v1305_v50 = vpop.f32.mrf.mxu1 }
 0x1cf   : > { %1170 = vrot.lane.b32.xlu1 %v1087_v58, %s1618_s18  ;;  %v2175_v24 = vadd.f32 %v919_v12, %v911_v35  ;;  %v970_v27 = vmul.f32 0.25, %v962_v37  ;;  %v2178_v32 = vadd.f32 %v1927_v18, %v907_v9  ;;  %v924_v44 = vadd.f32 %v1995_v56, %v908_v14 }
 0x1d0   : > { %v2181_v55 = vadd.f32 %v921_v4, %v913_v10  ;;  %v971_v16 = vmul.f32 0.25, %v963_v34  ;;  %v977_v3 = vadd.f32 %v969_v0, %v920_v8  ;;  %v1018_v40 = vsel %vm856_vm8, %v2089_v54, %v1000_v47 }
 0x1d1   : > { %v1017_v60 = vsel %vm855_vm10, %v2046_v49, %v998_v46  ;;  %v1055_v45 = vrot.slane %v2089_v54, 1  ;;  %v1057_v61 = vrot.slane %v2078_v52, 1  ;;  %1168 = vrot.lane.b32.xlu0 %v1086_v41, %s1618_s18  ;;  %v1054_v18 = vsel %vm931_vm6, %v1051_v17, %v1053_v11 }
 0x1d2   : > { %v1002_v56 = vsel %vm874_vm4, %v999_v21, %v1001_v63  ;;  %v978_v0 = vadd.f32 %v970_v27, %v921_v4  ;;  %v1026_v15 = vmul.f32 0.25, %v1018_v40  ;;  %v1034_v6 = vmul.f32 0.75, %v2089_v54 }
 0x1d3   : > { %1110 = vrot.lane.b32.xlu1 %v977_v3, %s1616_s16  ;;  %v1025_v12 = vmul.f32 0.25, %v1017_v60  ;;  %v979_v13 = vadd.f32 %v971_v16, %v922_v57  ;;  %v1072_v59 = vsel %vm862_vm2, %v1980_v42, %v1054_v18  ;;  %v1019_v36 = vsel %vm857_vm15, %v2078_v52, %v1002_v56  ;;  %v1586_v16 = vpop.f32.mrf.mxu1 }
 0x1d4   : > { %v1058_v17 = vsel %vm931_vm6, %v1055_v45, %v1057_v61  ;;  %v1056_v34 = vsel %vm931_vm6, %v1053_v11, %v1055_v45  ;;  %v1033_v21 = vmul.f32 0.75, %v2046_v49  ;;  %v1042_v25 = vadd.f32 %v1034_v6, %v1026_v15 }
 0x1d5   : > { %1112 = vrot.lane.b32.xlu0 %v978_v0, %s1616_s16  ;;  %v1080_v33 = vmul.f32 0.25, %v1072_v59  ;;  %v1027_v1 = vmul.f32 0.25, %v1019_v36  ;;  %v1035_v7 = vmul.f32 0.75, %v2078_v52  ;;  %v1074_v58 = vsel %vm864_vm7, %v2089_v54, %v1058_v17  ;;  %v1315_v18 = vpop.f32.mrf.mxu1 }
 0x1d6   : > { %v1041_v42 = vadd.f32 %v1033_v21, %v1025_v12  ;;  %v1073_v38 = vsel %vm863_vm1, %v2046_v49, %v1056_v34  ;;  %v1067_v11 = vsel %vm931_vm6, %v1057_v61, %v2078_v52  ;;  %v1082_v4 = vmul.f32 0.25, %v1074_v58 }
 0x1d7   : > { %1114 = vrot.lane.b32.xlu1 %v979_v13, %s1616_s16  ;;  %v1088_v8 = vadd.f32 %v1080_v33, %v2118_v39  ;;  %v1081_v57 = vmul.f32 0.25, %v1073_v38  ;;  %v1043_v22 = vadd.f32 %v1035_v7, %v1027_v1  ;;  %v1075_v62 = vsel %vm865_vm5, %v2078_v52, %v1067_v11  ;;  %v1589_v59 = vpop.f32.mrf.mxu1 }
 0x1d8   : > { %v1090_v5 = vadd.f32 %v1082_v4, %v1034_v6  ;;  %v1083_v49 = vmul.f32 0.25, %v1075_v62  ;;  %vm1188_vm5 = vcmask 130048   ;;  %vm1205_vm4 = vcmask 392192  }
 0x1d9   : > { %1144 = vrot.lane.b32.xlu0 %v1042_v25, %s1617_s17  ;;  %v1089_v54 = vadd.f32 %v1081_v57, %v1033_v21  ;;  %vm2301_vm6 = vcmask 523264  }
 0x1da   : > { %v1091_v39 = vadd.f32 %v1083_v49, %v1035_v7  ;;  %vm2302_vm9 = vmmov %vm2301_vm6 }
 0x1db   : > { %1142 = vrot.lane.b32.xlu1 %v1041_v42, %s1617_s17  ;;  %vm2303_vm10 = vmmov %vm2301_vm6 }
 0x1dc   : > { %vm2304_vm11 = vmmov %vm2301_vm6 }
 0x1dd   : > { %1172 = vrot.lane.b32.xlu0 %v1088_v8, %s1618_s18  ;;  %vm2305_vm12 = vmmov %vm2301_vm6 }
 0x1de   : > { %vm2306_vm13 = vmmov %vm2301_vm6 }
 0x1df   : > { %1146 = vrot.lane.b32.xlu1 %v1043_v22, %s1617_s17  ;;  %vm2307_vm14 = vmmov %vm2301_vm6 }
 0x1e0   : > { %vm2308_vm15 = vmmov %vm2301_vm6 }
 0x1e1   : > { %1176 = vrot.lane.b32.xlu0 %v1090_v5, %s1618_s18 }
 0x1e3   : > { %1174 = vrot.lane.b32.xlu1 %v1089_v54, %s1618_s18 }
 0x1e7   : > { %1178 = vrot.lane.b32.xlu1 %v1091_v39, %s1618_s18 }
 0x223   : > { %v1101_v37 = vpop.permute.xlu0 %1100 }
 0x224   : > { %v1189_v23 = vsel %vm1188_vm5, %v2178_v32, %v1101_v37 }
 0x227   : > { %v1133_v26 = vpop.permute.xlu0 %1132 }
 0x228   : > { %v1197_v9 = vsel %vm349_vm0, %v1189_v23, %v1133_v26 }
 0x22b   : > { %v1103_v47 = vpop.permute.xlu1 %1102 }
 0x22c   : > { %v1190_v28 = vsel %vm1188_vm5, %v924_v44, %v1103_v47 }
 0x22f   : > { %v1135_v31 = vpop.permute.xlu1 %1134  ;;  %v1105_v52 = vpop.permute.xlu0 %1104 }
 0x230   : > { %v1198_v30 = vsel %vm349_vm0, %v1190_v28, %v1135_v31  ;;  %v1191_v45 = vsel %vm1188_vm5, %v2131_v51, %v1105_v52  ;;  %v1325_v51 = vpop.f32.mrf.mxu1 }
 0x232   : > { %v1592_v42 = vpop.f32.mrf.mxu1 }
 0x233   : > { %v1137_v2 = vpop.permute.xlu0 %1136 }
 0x234   : > { %v1167_v48 = vpop.permute.xlu1 %1166  ;;  %v1199_v56 = vsel %vm349_vm0, %v1191_v45, %v1137_v2  ;;  %v1335_v4 = vpop.f32.mrf.mxu1 }
 0x235   : > { %v1207_v53 = vsel %vm1205_vm4, %v1198_v30, %v1167_v48 }
 0x236   : > { %v1311_v35 = vadd.f32 %v1583_v19, %v1207_v53 }
 0x237   : > { %v1165_v14 = vpop.permute.xlu0 %1164 }
 0x238   : > { %1345 = vst.msk [vmem:[%s2240_s21 + $0x8] sm:$0xff] %vm2301_vm6, %v1311_v35  ;;  %v1206_v46 = vsel %vm1205_vm4, %v1197_v9, %v1165_v14 }
 0x239   : > { %v1107_v10 = vpop.permute.xlu1 %1106  ;;  %v1306_v63 = vadd.f32 %v1305_v50, %v1206_v46 }
 0x23a   : > { %v1192_v32 = vsel %vm1188_vm5, %v2135_v20, %v1107_v10 }
 0x23b   : > { %1344 = vst.msk [vmem:[%s2240_s21] sm:$0xff] %vm2302_vm9, %v1306_v63  ;;  %v1109_v41 = vpop.permute.xlu0 %1108 }
 0x23c   : > { %v1193_v34 = vsel %vm1188_vm5, %v2175_v24, %v1109_v41 }
 0x23d   : > { %v1139_v27 = vpop.permute.xlu1 %1138 }
 0x23e   : > { %v1200_v3 = vsel %vm349_vm0, %v1192_v32, %v1139_v27 }
 0x23f   : > { %v1141_v44 = vpop.permute.xlu0 %1140 }
 0x240   : > { %v1201_v21 = vsel %vm349_vm0, %v1193_v34, %v1141_v44 }
 0x241   : > { %v1171_v40 = vpop.permute.xlu1 %1170 }
 0x242   : > { %v1209_v60 = vsel %vm1205_vm4, %v1200_v3, %v1171_v40 }
 0x243   : > { %v1321_v61 = vadd.f32 %v1586_v16, %v1209_v60  ;;  %v1169_v0 = vpop.permute.xlu0 %1168 }
 0x244   : > { %v1208_v20 = vsel %vm1205_vm4, %v1199_v56, %v1169_v0 }
 0x245   : > { %1347 = vst.msk [vmem:[%s2240_s21 + $0x18] sm:$0xff] %vm2303_vm10, %v1321_v61  ;;  %v1111_v15 = vpop.permute.xlu1 %1110  ;;  %v1316_v6 = vadd.f32 %v1315_v18, %v1208_v20 }
 0x246   : > { %v1194_v38 = vsel %vm1188_vm5, %v2142_v43, %v1111_v15 }
 0x247   : > { %1346 = vst.msk [vmem:[%s2240_s21 + $0x10] sm:$0xff] %vm2304_vm11, %v1316_v6  ;;  %v1113_v12 = vpop.permute.xlu0 %1112 }
 0x248   : > { %v1195_v58 = vsel %vm1188_vm5, %v2181_v55, %v1113_v12 }
 0x249   : > { %v1115_v13 = vpop.permute.xlu1 %1114 }
 0x24a   : > { %v1196_v55 = vsel %vm1188_vm5, %v2167_v29, %v1115_v13 }
 0x24b   : > { %v1145_v36 = vpop.permute.xlu0 %1144 }
 0x24c   : > { %v1203_v11 = vsel %vm349_vm0, %v1195_v58, %v1145_v36 }
 0x24d   : > { %v1143_v17 = vpop.permute.xlu1 %1142 }
 0x24e   : > { %v1202_v8 = vsel %vm349_vm0, %v1194_v38, %v1143_v17 }
 0x24f   : > { %v1173_v25 = vpop.permute.xlu0 %1172 }
 0x250   : > { %v1210_v33 = vsel %vm1205_vm4, %v1201_v21, %v1173_v25 }
 0x251   : > { %v1147_v1 = vpop.permute.xlu1 %1146  ;;  %v1326_v7 = vadd.f32 %v1325_v51, %v1210_v33 }
 0x252   : > { %v1204_v43 = vsel %vm349_vm0, %v1196_v55, %v1147_v1 }
 0x253   : > { %1348 = vst.msk [vmem:[%s2240_s21 + $0x20] sm:$0xff] %vm2305_vm12, %v1326_v7  ;;  %v1177_v24 = vpop.permute.xlu0 %1176 }
 0x254   : > { %v1212_v57 = vsel %vm1205_vm4, %v1203_v11, %v1177_v24 }
 0x255   : > { %v1175_v22 = vpop.permute.xlu1 %1174  ;;  %v1336_v62 = vadd.f32 %v1335_v4, %v1212_v57 }
 0x256   : > { %v1211_v5 = vsel %vm1205_vm4, %v1202_v8, %v1175_v22 }
 0x257   : > { %v1331_v49 = vadd.f32 %v1589_v59, %v1211_v5  ;;  %1350 = vst.msk [vmem:[%s2240_s21 + $0x30] sm:$0xff] %vm2306_vm13, %v1336_v62 }
 0x259   : > { %1349 = vst.msk [vmem:[%s2240_s21 + $0x28] sm:$0xff] %vm2307_vm14, %v1331_v49  ;;  %v1179_v54 = vpop.permute.xlu1 %1178 }
 0x25a   : > { %v1213_v39 = vsel %vm1205_vm4, %v1204_v43, %v1179_v54 }
 0x25b   : > { %v1341_v37 = vadd.f32 %v1592_v42, %v1213_v39 }
 0x25d   : > { %1351 = vst.msk [vmem:[%s2240_s21 + $0x38] sm:$0xff] %vm2308_vm15, %v1341_v37 }
 0x25e PF: > { %s21_s13 = sadd.s32 1, %s1613_s13  }
 0x25f   : > { %p18_p4 = scmp.ge.s32.totalorder %s21_s13, 4  }
 0x261   :  { %20 = sbr.rel (!%p18_p4) target bundleno = 3 (0x3), region = 86 }

</bundles_post_ra>
